<compile_context>
chip_gen: v5e
topology: v5e:2x2
jax: 0.10.0
libtpu: 0.0.40
codegen_flags: <defaults>
</compile_context>

<pallas_src>
import numpy as np
import jax
import jax.numpy as jnp
from jax import lax
from jax.experimental import pallas as pl
from jax.experimental.pallas import tpu as pltpu


def attention_kernel(x_ref, w_ref, len_ref, weighted_ref, attn_ref):
    # x_ref:        (bt, L, H)   input dtype
    # w_ref:        (1, H)       f32
    # len_ref:      (bt, 1)      i32
    # weighted_ref: (bt, L, H)   input dtype
    # attn_ref:     (bt, L)      f32  (lane-dense output)
    w = w_ref[...].astype(jnp.float32)                           # (1, H)

    # Score projection: lane reduce over H with keepdims so every (bt, L, 1)
    # intermediate keeps L on sublanes (no relayout before the broadcast
    # multiply against x).  Kept off the MXU on purpose: the kernel is
    # HBM-bound and a width-1 matmul wastes the systolic array.  The product
    # fuses into the reduce; if a bundle dump ever shows it materialized as a
    # full (bt, L, H) temporary, chunk the reduction over H instead.
    xf = x_ref[...].astype(jnp.float32)                          # (bt, L, H)
    scores = jnp.sum(xf * w.reshape(1, 1, -1), axis=-1, keepdims=True)
    scores = jnp.maximum(scores, 0.0)                            # relu, (bt, L, 1)

    # Numerically-stable masked softmax.  The PyTorch module normalizes twice
    # (softmax, then mask + renormalize); the first Sum(exp) cancels exactly,
    # so go straight from exp() to the single masked normalization.
    m = jnp.max(scores, axis=1, keepdims=True)                   # (bt, 1, 1)
    e = jnp.exp(scores - m)                                      # (bt, L, 1)
    pos = lax.broadcasted_iota(jnp.int32, e.shape, 1)            # (bt, L, 1)
    mask = (pos < len_ref[...][:, :, None]).astype(jnp.float32)  # (bt, L, 1)
    masked = e * mask
    denom = jnp.sum(masked, axis=1, keepdims=True)               # (bt, 1, 1)
    # Matches PyTorch: lengths[b] == 0 divides by zero (NaN) just like torch.
    attn = masked / denom                                        # (bt, L, 1)

    # Re-read x from VMEM at the use site (don't keep the big tile live in
    # vregs across the softmax chain); single full-tile store of the output,
    # attn broadcasts along the lane (H) axis for free.
    weighted_ref[...] = (x_ref[...].astype(jnp.float32) * attn).astype(
        weighted_ref.dtype)

    # Lane-dense attention output: fold the width-1 lane axis away so L lands
    # on lanes (cheap XLU relayout on a tiny tensor), giving unmasked stores
    # and a ~128x smaller attn output block than the (bt, L, 1) layout.
    attn_ref[...] = attn.reshape(attn_ref.shape).astype(attn_ref.dtype)


def _round_up(x, m):
    return ((x + m - 1) // m) * m


def _vmem_capacity_bytes():
    """Per-TensorCore VMEM capacity; conservative fallback if unknown."""
    try:
        info = pltpu.get_tpu_info()
        for name in ("vmem_capacity_bytes", "vmem_bytes", "vmem_size_bytes"):
            v = getattr(info, name, None)
            if v:
                return int(v)
    except Exception:
        pass
    try:
        kind = jax.devices()[0].device_kind.lower()
    except Exception:
        kind = ""
    if ("v5" in kind) or ("v6" in kind):
        return 128 * 1024 * 1024
    # v7x (64 MiB per TC) or unknown: stay conservative.
    return 64 * 1024 * 1024


def _vmem_budget_and_limit():
    cap = _vmem_capacity_bytes()
    if cap >= 96 * 1024 * 1024:            # v5e / v6e: 128 MiB per TensorCore
        return 96 * 1024 * 1024, 110 * 1024 * 1024
    # v7x: keep the double-buffered working set well under the 64 MiB VMEM
    # and leave headroom under the limit for compiler temporaries.
    return 40 * 1024 * 1024, 56 * 1024 * 1024


def _choose_batch_tile(B, L, H, itemsize, budget_bytes):
    """Largest batch tile whose *padded*, double-buffered working set fits the
    budget, while keeping the grid multi-step (DMA overlap + v7x megacore)."""
    Lp = _round_up(L, 8)          # sublane padding of the (L, H) tile
    Hp = _round_up(H, 128)        # lane padding of the (L, H) tile
    Ll = _round_up(L, 128)        # lane padding of the (bt, L) attn block
    per_row = 2 * (2 * Lp * Hp * itemsize   # x in + weighted out (dbl-buffered)
                   + Ll * 4                 # attn out, lane-dense f32
                   + 128 * 4)               # lengths (bt, 1) i32 block
    bt = max(1, int(budget_bytes) // per_row)
    # Keep >= ~8 grid steps so in-DMA / compute / out-DMA overlap and the
    # "parallel" batch axis can be sharded across both TensorCores on v7x.
    bt = min(bt, max(1, pl.cdiv(B, 8)))
    if bt >= B:
        return B
    # A block smaller than the full batch puts bt on a sublane dim of the
    # 2-D lengths / attention blocks -> must be a multiple of 8.
    bt = (bt // 8) * 8
    if bt < 8:
        return B if B <= 8 else 8
    return bt


def attention_forward(inputs, att_weights, lengths, *, batch_tile=None):
    """inputs: (B, L, H) f32/bf16 (batch-first); att_weights: (1, H) f32;
    lengths: (B,) int. Returns (weighted (B, L, H), attentions (B, L) f32)."""
    B, L, H = inputs.shape
    budget, vmem_limit = _vmem_budget_and_limit()
    bt = (batch_tile if batch_tile is not None
          else _choose_batch_tile(B, L, H, inputs.dtype.itemsize, budget))
    bt = min(bt, B)
    if bt != B and bt % 8 != 0:
        raise ValueError("batch_tile must be a multiple of 8 or equal to B "
                         "(sublane rule for the 2-D lengths/attention blocks)")
    grid = (pl.cdiv(B, bt),)   # ragged tail block allowed; OOB writes dropped

    lengths2d = lengths.reshape(B, 1).astype(jnp.int32)

    itemsize = inputs.dtype.itemsize
    cost = pl.CostEstimate(
        flops=3 * B * L * H + 5 * B * L,
        transcendentals=B * L,
        bytes_accessed=2 * B * L * H * itemsize + B * L * 4 + H * 4 + B * 4,
    )

    out_shape = (
        jax.ShapeDtypeStruct((B, L, H), inputs.dtype),   # weighted
        jax.ShapeDtypeStruct((B, L), jnp.float32),       # attentions, lane-dense
    )

    weighted, attn = pl.pallas_call(
        attention_kernel,
        out_shape=out_shape,
        grid=grid,
        in_specs=[
            pl.BlockSpec((bt, L, H), lambda i: (i, 0, 0)),   # batch-tiled input
            pl.BlockSpec((1, H), lambda i: (0, 0)),          # att weights (resident)
            pl.BlockSpec((bt, 1), lambda i: (i, 0)),         # lengths
        ],
        out_specs=(
            pl.BlockSpec((bt, L, H), lambda i: (i, 0, 0)),
            pl.BlockSpec((bt, L), lambda i: (i, 0)),
        ),
        compiler_params=pltpu.CompilerParams(
            # batch tiles are independent: pipeline them and (on v7x) shard
            # across both TensorCores.
            dimension_semantics=("parallel",),
            vmem_limit_bytes=vmem_limit,
        ),
        cost_estimate=cost,
    )(inputs, att_weights.astype(jnp.float32), lengths2d)

    return weighted, attn


def _reference(inputs, att_weights, lengths):
    # Pure-JAX mirror of the PyTorch forward (batch-first).
    B, L, H = inputs.shape
    scores = jnp.einsum("blh,h->bl", inputs.astype(jnp.float32),
                        att_weights[0].astype(jnp.float32))
    attn = jax.nn.softmax(jax.nn.relu(scores), axis=-1)
    pos = jnp.arange(L)[None, :]
    mask = (pos < lengths[:, None]).astype(attn.dtype)
    masked = attn * mask
    attn = masked / jnp.sum(masked, axis=-1, keepdims=True)
    weighted = inputs * attn[:, :, None].astype(inputs.dtype)
    return weighted, attn


if __name__ == "__main__":
    key = jax.random.PRNGKey(0)
    k_in, k_w, k_in2 = jax.random.split(key, 3)

    L, H = 8, 128
    stdv = 1.0 / float(np.sqrt(H))
    att_weights = jax.random.uniform(
        k_w, (1, H), minval=-stdv, maxval=stdv, dtype=jnp.float32)

    # Case 1: explicit batch_tile=8 -> grid=(2,) exercises BlockSpec
    # pipelining over batch tiles and the lane-dense attn output path.
    B = 16
    inputs = jax.random.normal(k_in, (B, L, H), dtype=jnp.float32)
    lengths = jnp.array([L, 5, 3, L, 1, 7, 2, L, 6, 4, L, 2, 5, 3, 8, 1],
                        dtype=jnp.int32)
    weighted, attn = attention_forward(inputs, att_weights, lengths, batch_tile=8)
    jax.block_until_ready((weighted, attn))
    ref_w, ref_a = _reference(inputs, att_weights, lengths)
    np.testing.assert_allclose(np.asarray(weighted), np.asarray(ref_w),
                               rtol=1e-5, atol=1e-5)
    np.testing.assert_allclose(np.asarray(attn), np.asarray(ref_a),
                               rtol=1e-5, atol=1e-5)

    # Case 2: ragged batch (B=12 not a multiple of the 8-row tile) with
    # automatic tile selection -> pl.cdiv grid, tail-block OOB writes dropped.
    B2 = 12
    inputs2 = jax.random.normal(k_in2, (B2, L, H), dtype=jnp.float32)
    lengths2 = jnp.array([L, 5, 3, L, 1, 7, 2, L, 6, 4, 8, 2], dtype=jnp.int32)
    weighted2, attn2 = attention_forward(inputs2, att_weights, lengths2)
    jax.block_until_ready((weighted2, attn2))
    ref_w2, ref_a2 = _reference(inputs2, att_weights, lengths2)
    np.testing.assert_allclose(np.asarray(weighted2), np.asarray(ref_w2),
                               rtol=1e-5, atol=1e-5)
    np.testing.assert_allclose(np.asarray(attn2), np.asarray(ref_a2),
                               rtol=1e-5, atol=1e-5)

    print("KERNEL_OK")
</pallas_src>

<mosaic_0001>
module attributes {stable_mosaic.version = 11 : i64} {
  func.func @attention_kernel(%arg0: i32, %arg1: memref<8x8x128xf32, #tpu.memory_space<vmem>>, %arg2: memref<1x128xf32, #tpu.memory_space<vmem>>, %arg3: memref<8x1xi32, #tpu.memory_space<vmem>>, %arg4: memref<8x8x128xf32, #tpu.memory_space<vmem>>, %arg5: memref<8x8xf32, #tpu.memory_space<vmem>>) attributes {dimension_semantics = [#tpu.dimension_semantics<parallel>], iteration_bounds = array<i64: 2>, scalar_prefetch = 0 : i64, scratch_operands = 0 : i64, tpu.core_type = #tpu.core_type<tc>, window_params = [{transform_indices = @transform_0, window_bounds = array<i64: 8, 8, 128>}, {pipeline_mode = #tpu.pipeline_mode<synchronous>, transform_indices = @transform_1, window_bounds = array<i64: 1, 128>}, {transform_indices = @transform_2, window_bounds = array<i64: 8, 1>}, {transform_indices = @transform_3, window_bounds = array<i64: 8, 8, 128>}, {transform_indices = @transform_4, window_bounds = array<i64: 8, 8>}]} {
    %c0 = arith.constant 0 : index
    %c0_0 = arith.constant 0 : index
    %0 = vector.load %arg2[%c0, %c0_0] : memref<1x128xf32, #tpu.memory_space<vmem>>, vector<1x128xf32>
    %c0_1 = arith.constant 0 : index
    %c0_2 = arith.constant 0 : index
    %c0_3 = arith.constant 0 : index
    %1 = vector.load %arg1[%c0_1, %c0_2, %c0_3] : memref<8x8x128xf32, #tpu.memory_space<vmem>>, vector<8x8x128xf32>
    %2 = vector.shape_cast %0 : vector<1x128xf32> to vector<1x1x128xf32>
    %3 = vector.broadcast %2 : vector<1x1x128xf32> to vector<8x8x128xf32>
    %4 = arith.mulf %1, %3 : vector<8x8x128xf32>
    %cst = arith.constant dense<0.000000e+00> : vector<8x8xf32>
    %5 = vector.multi_reduction <add>, %4, %cst [2] : vector<8x8x128xf32> to vector<8x8xf32>
    %6 = vector.shape_cast %5 : vector<8x8xf32> to vector<8x8x1xf32>
    %cst_4 = arith.constant 0.000000e+00 : f32
    %7 = vector.broadcast %cst_4 : f32 to vector<8x8x1xf32>
    %8 = arith.maximumf %6, %7 : vector<8x8x1xf32>
    %cst_5 = arith.constant dense<0xFF800000> : vector<8x1xf32>
    %9 = vector.multi_reduction <maximumf>, %8, %cst_5 [1] : vector<8x8x1xf32> to vector<8x1xf32>
    %10 = vector.shape_cast %9 : vector<8x1xf32> to vector<8x1x1xf32>
    %11 = vector.broadcast %10 : vector<8x1x1xf32> to vector<8x8x1xf32>
    %12 = arith.subf %8, %11 : vector<8x8x1xf32>
    %13 = math.exp %12 : vector<8x8x1xf32>
    %14 = tpu.iota {dimensions = array<i32: 1>} : vector<8x8x1xi32>
    %c0_6 = arith.constant 0 : index
    %c0_7 = arith.constant 0 : index
    %15 = vector.load %arg3[%c0_6, %c0_7] : memref<8x1xi32, #tpu.memory_space<vmem>>, vector<8x1xi32>
    %16 = vector.shape_cast %15 : vector<8x1xi32> to vector<8x1x1xi32>
    %17 = vector.broadcast %16 : vector<8x1x1xi32> to vector<8x8x1xi32>
    %18 = arith.cmpi slt, %14, %17 : vector<8x8x1xi32>
    %19 = arith.extui %18 : vector<8x8x1xi1> to vector<8x8x1xi32>
    %20 = arith.sitofp %19 : vector<8x8x1xi32> to vector<8x8x1xf32>
    %21 = arith.mulf %13, %20 : vector<8x8x1xf32>
    %cst_8 = arith.constant dense<0.000000e+00> : vector<8x1xf32>
    %22 = vector.multi_reduction <add>, %21, %cst_8 [1] : vector<8x8x1xf32> to vector<8x1xf32>
    %23 = vector.shape_cast %22 : vector<8x1xf32> to vector<8x1x1xf32>
    %24 = vector.broadcast %23 : vector<8x1x1xf32> to vector<8x8x1xf32>
    %25 = arith.divf %21, %24 : vector<8x8x1xf32>
    %c0_9 = arith.constant 0 : index
    %c0_10 = arith.constant 0 : index
    %c0_11 = arith.constant 0 : index
    %26 = vector.load %arg1[%c0_9, %c0_10, %c0_11] : memref<8x8x128xf32, #tpu.memory_space<vmem>>, vector<8x8x128xf32>
    %27 = vector.broadcast %25 : vector<8x8x1xf32> to vector<8x8x128xf32>
    %28 = arith.mulf %26, %27 : vector<8x8x128xf32>
    %c0_12 = arith.constant 0 : index
    %c0_13 = arith.constant 0 : index
    %c0_14 = arith.constant 0 : index
    %29 = vector.load %arg4[%c0_12, %c0_13, %c0_14] : memref<8x8x128xf32, #tpu.memory_space<vmem>>, vector<8x8x128xf32>
    tpu.vector_store %arg4[%c0_12, %c0_13, %c0_14], %28 {strides = array<i32>} : memref<8x8x128xf32, #tpu.memory_space<vmem>>, vector<8x8x128xf32>,
    %30 = vector.shape_cast %25 : vector<8x8x1xf32> to vector<8x8xf32>
    %c0_15 = arith.constant 0 : index
    %c0_16 = arith.constant 0 : index
    %31 = vector.load %arg5[%c0_15, %c0_16] : memref<8x8xf32, #tpu.memory_space<vmem>>, vector<8x8xf32>
    tpu.vector_store %arg5[%c0_15, %c0_16], %30 {strides = array<i32>} : memref<8x8xf32, #tpu.memory_space<vmem>>, vector<8x8xf32>,
    return
  }
  func.func @transform_0(%arg0: i32) -> (i32, i32, i32) {
    %c0_i32 = arith.constant 0 : i32
    %c0_i32_0 = arith.constant 0 : i32
    %c0_i32_1 = arith.constant 0 : i32
    return %arg0, %c0_i32, %c0_i32_0 : i32, i32, i32
  }
  func.func @transform_1(%arg0: i32) -> (i32, i32) {
    %c0_i32 = arith.constant 0 : i32
    %c0_i32_0 = arith.constant 0 : i32
    %c0_i32_1 = arith.constant 0 : i32
    return %c0_i32, %c0_i32_0 : i32, i32
  }
  func.func @transform_2(%arg0: i32) -> (i32, i32) {
    %c0_i32 = arith.constant 0 : i32
    %c0_i32_0 = arith.constant 0 : i32
    return %arg0, %c0_i32 : i32, i32
  }
  func.func @transform_3(%arg0: i32) -> (i32, i32, i32) {
    %c0_i32 = arith.constant 0 : i32
    %c0_i32_0 = arith.constant 0 : i32
    %c0_i32_1 = arith.constant 0 : i32
    return %arg0, %c0_i32, %c0_i32_0 : i32, i32, i32
  }
  func.func @transform_4(%arg0: i32) -> (i32, i32) {
    %c0_i32 = arith.constant 0 : i32
    %c0_i32_0 = arith.constant 0 : i32
    return %arg0, %c0_i32 : i32, i32
  }
}

</mosaic_0001>

<bundles_post_ra>
// kernel: tpu_custom_call.1
= control target key start
LH: loop header
LB: loop body
LE: loop exit
PB: predicated region body
PF: predicated region fallthrough
CT: control target
= control target key end

     0   :  { %10 = vsyncpa [#allocation3], 0  ;;  %s1427_s0 = inlined_call_operand.hbm [shape: f32[16,8,128], index: 0, kind: input, shape index: {}]   ;;  %s1428_s1 = inlined_call_operand.vmem [shape: f32[1,128], index: 1, kind: input, shape index: {}]   ;;  %s1429_s2 = inlined_call_operand.vmem [shape: s32[16,1], index: 2, kind: input, shape index: {}]   ;;  %s1430_s3 = inlined_call_operand.hbm [shape: f32[16,8,128], index: 3, kind: output, shape index: {0}]   ;;  %s1431_s4 = inlined_call_operand.vmem [shape: f32[16,8], index: 4, kind: output, shape index: {1}]  }
   0x1   :  { %12 = vsyncpa [#allocation3 + $0x1], 0 }
   0x2   :  { %13 = vsyncpa [#allocation4], 0 }
   0x3   :  { %15 = vsyncpa [#allocation4 + $0x1], 0  ;;  %s1049_s15 = smov 0   ;;  %s1051_s16 = smov 0  }
   0x4   :  { %s1053_s17 = smov 0   ;;  %s1055_s18 = smov 0  }
   0x5 LB: > { %s1070_s19 = sadd.s32 4294967295, %s1016_s18   ;;  %s806_s20 = sadd.s32 4294967294, %s1016_s18   ;;  %s1016_s18 = sphi %s1055_s18, %s1449_s18   ;;  %s1012_s17 = sphi %s1053_s17, %s1448_s17   ;;  %s1008_s16 = sphi %s1051_s16, %s1447_s16   ;;  %s1004_s15 = sphi %s1049_s15, %s1446_s15  }
   0x6   : > { %s1074_s21 = sadd.s32 1, %s1016_s18   ;;  %s28_s22 = sadd.s32 1, %s1012_s17 }
   0x7   : > { %s25_s23 = ssub.s32 %s1016_s18, %s1074_s21  ;;  %p35_p0 = scmp.ne.s32.totalorder %s1012_s17, %s1008_s16 }
   0x8   : > { %p26_p1 = scmp.eq.s32.totalorder %s25_s23, 0  ;;  %p36_p2 = scmp.eq.s32.totalorder %s1016_s18, 0 }
   0x9   : > { %p41_p3 = scmp.ne.s32.totalorder %s1008_s16, %s1004_s15  ;;  %p42_p4 = scmp.eq.s32.totalorder %s1070_s19, 0 }
   0xa   : > { %s1086_s24 = scalar_select %p26_p1, %s1012_s17, %s28_s22  }
   0xb   : > { %p1088_p5 = por %p36_p2, %p35_p0  ;;  %p1092_p6 = por %p42_p4, %p41_p3 }
   0xc   : > { %p112_p7 = scmp.eq.s32.totalorder %s1070_s19, 1  ;;  %p118_p8 = scmp.eq.s32.totalorder %s806_s20, 1 }
   0xd   : > { %p844_p10 = scmp.lt.s32.totalorder %s1016_s18, 2  ;;  %s167_s29 = sand.u32 1, %s1012_s17  }
   0xe   : > { %p1099_p11 = por %p112_p7, %p35_p0  ;;  %p1103_p12 = por %p118_p8, %p41_p3 }
   0xf   : > { %s830_s30 = sshll.u32 %s1016_s18, 6  ;;  %s809_s5 = sshll.u32 %s167_s29, 6 }
  0x10   : > { %s176_s8 = scalar_lea.hbm %s1427_s0, %s830_s30  ;;  %s171_s10 = scalar_lea.vmem [#allocation2], %s809_s5 }
  0x11   : > { %s177_s9 = sshll.u32 %s176_s8, 4  ;;  %s179_s11 = sshll.u32 %s171_s10, 4  ;;  %s178_s9 = int_to_ptr.hbm [resolvable:$true] %s177_s9  ;;  %s180_s11 = int_to_ptr.vmem [resolvable:$true] %s179_s11 }
  0x12   : > { %p1114_p13 = pnand %p844_p10, %p1088_p5  ;;  %p812_p0 = scmp.ge.s32.totalorder %s1016_s18, 1 }
  0x13   : > { %p194_p1 = scmp.lt.s32.totalorder %s1016_s18, 3  ;;  %s168_s13 = scalar_lea.sflag [#allocation3], %s167_s29 }
  0x14   : > { %s920_s14 = sshra.s32 %s178_s9, 4  ;;  %p924_p3 = pneg %p1114_p13  ;;  %s921_s14 = int_to_ptr.hbm [resolvable:$true] %s920_s14 }
  0x15   : > { %s922_s20 = scalar_lea.hbm %s921_s14, 64  ;;  %s927_s25 = scalar_lea.hbm %s1427_s0, 128 }
  0x16   : > { %p923_p2 = scmp.ne.s32.totalorder %s921_s14, %s922_s20  ;;  %p928_p5 = scmp.lt.s32.totalorder %s921_s14, %s1427_s0 }
  0x17   : > { %p929_p8 = scmp.lt.s32.totalorder %s927_s25, %s922_s20 }
  0x18   : > { %p925_p4 = pnand %p924_p3, %p923_p2 }
  0x19   : > { %p930_p10 = por %p929_p8, %p928_p5 }
  0x1a   : > { %p926_p7 = pneg %p925_p4 }
  0x1c   : > { %p931_p9 = pnand %p930_p10, %p926_p7 }
  0x1e   : > { %934 = shalt.err (!%p931_p9)
}
  0x1f   : > { %s1018_s29 = smov 128   ;;  %s1019_s6 = smov 8  }
  0x20   : > { %839 = dma.hbm_to_vmem [thread:$0]  (!%p1114_p13), %s178_s9, 1024, %s180_s11, %s168_s13, %s1018_s29, %s1018_s29, %s1019_s6  }
  0x21   : > { %p195_p2 = pnand %p812_p0, %p194_p1 }
  0x22   : > { %s1135_s7 = sand.u32 (!%p195_p2), 1, %s1008_s16  }
  0x23   : > { %198 = sbr.rel (%p195_p2) target bundleno = 365 (0x16d), region = 32  ;;  %s813_s8 = sshll.u32 (!%p195_p2), %s1135_s7, 6 }
  0x24   : > { %s201_s10 = scalar_lea.sflag (!%p195_p2), [#allocation3], %s1135_s7  ;;  %s204_s14 = scalar_lea.vmem (!%p195_p2), [#allocation2], %s813_s8 }
  0x28   : > { %995 = dma.done.wait (%p1092_p6), %s201_s10, 1024  }
  0x29   : > { %997 = vsyncadd (%p1092_p6), %s201_s10, 4294966272  ;;  %v1145_v0 = vld [vmem:[%s204_s14 + $0x20] sm:$0xff]  ;;  %v1150_v2 = vld [vmem:[%s204_s14 + $0x10] sm:$0xff]  ;;  %p239_p6 = scmp.lt.s32.totalorder %s1070_s19, 1  ;;  %v364_v20 = vlaneseq  ;;  %v1020_v34 = vmov 0   ;;  %v1021_v62 = vmov 0.0  }
  0x2a   : > { %v887_v1 = vld [vmem:[%s1428_s1] ss:$0 sm:$0xff]  ;;  %v1157_v7 = vld [vmem:[%s204_s14 + $0x28] sm:$0xff]  ;;  %v1159_v8 = vld [vmem:[%s204_s14 + $0x18] sm:$0xff]  ;;  %886 = vset.pattern.permute.xlu1 %v1020_v34  ;;  %884 = vset.pattern.permute.xlu2 %v1020_v34  ;;  %vm414_vm3 = vcmask 7168   ;;  %s1367_s23 = scalar_lea.vmem [#allocation5], %s813_s8 }
  0x2b   : > { %v1152_v3 = vld [vmem:[%s204_s14] sm:$0xff]  ;;  %v264_v4 = vmul.f32 %v887_v1, %v1145_v0  ;;  %v262_v5 = vmul.f32 %v887_v1, %v1150_v2  ;;  %v1161_v9 = vld [vmem:[%s204_s14 + $0x8] sm:$0xff]  ;;  %v265_v10 = vmul.f32 %v887_v1, %v1157_v7  ;;  %v263_v11 = vmul.f32 %v887_v1, %v1159_v8  ;;  %v1166_v13 = vld [vmem:[%s204_s14 + $0x38] sm:$0xff]  ;;  %s1174_s26 = scalar_select %p239_p6, %s1070_s19, 1  ;;  %885 = vset.pattern.permute.xlu0 %v1020_v34 }
  0x2c   : > { %v260_v6 = vmul.f32 %v887_v1, %v1152_v3  ;;  %v261_v12 = vmul.f32 %v887_v1, %v1161_v9  ;;  %v1168_v14 = vld [vmem:[%s204_s14 + $0x30] sm:$0xff]  ;;  %v267_v15 = vmul.f32 %v887_v1, %v1166_v13  ;;  %v1186_v29 = vshrl.u32 %v364_v20, 7  ;;  %s831_s25 = sshll.u32 %s1070_s19, 6  ;;  %s691_s6 = sshll.u32 %s1367_s23, 4  ;;  %s1388_s6 = int_to_ptr.vmem [resolvable:$true] %s691_s6 }
  0x2d   : > { %276 = vadd.xlane.f32.xlu2 %v264_v4  ;;  %272 = vadd.xlane.f32.xlu1 %v262_v5  ;;  %v266_v16 = vmul.f32 %v887_v1, %v1168_v14  ;;  %s815_s12 = sshll.u32 %s1174_s26, 3  ;;  %s690_s29 = scalar_lea.hbm %s1430_s3, %s831_s25 }
  0x2e   : > { %268 = vadd.xlane.f32.xlu0 %v260_v6  ;;  %s242_s22 = scalar_lea.vmem %s1429_s2, %s815_s12  ;;  %s693_s8 = sshll.u32 %s690_s29, 4  ;;  %s694_s8 = int_to_ptr.hbm [resolvable:$true] %s693_s8 }
  0x2f   : > { %v1182_v17 = vld [vmem:[%s242_s22] sm:$0xff]  ;;  %s247_s14 = scalar_lea.vmem %s1431_s4, %s815_s12  ;;  %s675_s9 = scalar_lea.sflag [#allocation4], %s1135_s7 }
  0x30   : > { %v368_v21 = vrot.slane %v1182_v17, 2  ;;  %v374_v40 = vperm.slane %v1182_v17, 0  ;;  %v370_v48 = vrot.slane %v1182_v17, 4  ;;  %s964_s11 = sshra.s32 %s694_s8, 4  ;;  %s970_s20 = scalar_lea.hbm %s1430_s3, 128  ;;  %s965_s11 = int_to_ptr.hbm [resolvable:$true] %s964_s11 }
  0x31   : > { %s966_s26 = scalar_lea.hbm %s965_s11, 64  ;;  %p971_p1 = scmp.lt.s32.totalorder %s965_s11, %s1430_s3 }
  0x32   : > { %v376_v30 = vperm.slane %v368_v21, 0  ;;  %vm1201_vm1 = vcmp.lt.s32.totalorder %v1186_v29, %v374_v40  ;;  %v378_v1 = vperm.slane %v370_v48, 0  ;;  %p967_p9 = scmp.ne.s32.totalorder %s965_s11, %s966_s26  ;;  %p972_p3 = scmp.lt.s32.totalorder %s970_s20, %s966_s26 }
  0x34   : > { %vm384_vm0 = vcmp.lt.s32.totalorder %v1186_v29, %v376_v30  ;;  %vm386_vm2 = vcmp.lt.s32.totalorder %v1186_v29, %v378_v1  ;;  %p968_p13 = pnand %p967_p9, %p1099_p11  ;;  %p973_p4 = por %p972_p3, %p971_p1 }
  0x35   : > { %278 = vadd.xlane.f32.xlu2 %v265_v10  ;;  %274 = vadd.xlane.f32.xlu1 %v263_v11  ;;  %v819_v63 = vsel %vm384_vm0, 1.0, %v1021_v62  ;;  %v821_v48 = vsel %vm386_vm2, 1.0, %v1021_v62 }
  0x36   : > { %270 = vadd.xlane.f32.xlu0 %v261_v12  ;;  %p969_p0 = pneg %p968_p13 }
  0x38   : > { %p974_p7 = pnand %p973_p4, %p969_p0 }
  0x3d   : > { %282 = vadd.xlane.f32.xlu1 %v267_v15 }
  0x3e   : > { %280 = vadd.xlane.f32.xlu0 %v266_v16  ;;  %v371_v16 = vrot.slane %v1182_v17, 5 }
  0xa0   : > { %v277_v18 = vpop.xlane.xlu2 %276  ;;  %v273_v19 = vpop.xlane.xlu1 %272 }
  0xa1   : > { %v288_v22 = vmax.f32 %v277_v18, 0.0  ;;  %v286_v23 = vmax.f32 %v273_v19, 0.0  ;;  %v269_v24 = vpop.xlane.xlu0 %268  ;;  %v369_v18 = vrot.slane %v1182_v17, 3 }
  0xa2   : > { %v284_v25 = vmax.f32 %v269_v24, 0.0 }
  0xa3   : > { %v316_v26 = vrot.slane %v288_v22, 4  ;;  %v304_v27 = vrot.slane %v286_v23, 4 }
  0xa4   : > { %v292_v28 = vrot.slane %v284_v25, 4 }
  0xa5   : > { %v317_v31 = vmax.f32 %v288_v22, %v316_v26  ;;  %v305_v32 = vmax.f32 %v286_v23, %v304_v27 }
  0xa6   : > { %v293_v33 = vmax.f32 %v284_v25, %v292_v28 }
  0xa7   : > { %v318_v35 = vrot.slane %v317_v31, 2  ;;  %v306_v36 = vrot.slane %v305_v32, 2 }
  0xa8   : > { %v294_v37 = vrot.slane %v293_v33, 2  ;;  %v279_v38 = vpop.xlane.xlu2 %278  ;;  %v275_v39 = vpop.xlane.xlu1 %274 }
  0xa9   : > { %v319_v41 = vmax.f32 %v317_v31, %v318_v35  ;;  %v307_v42 = vmax.f32 %v305_v32, %v306_v36  ;;  %v1190_v43 = vmax.f32 %v279_v38, 0.0  ;;  %v1192_v44 = vmax.f32 %v275_v39, 0.0  ;;  %v271_v45 = vpop.xlane.xlu0 %270 }
  0xaa   : > { %v295_v46 = vmax.f32 %v293_v33, %v294_v37  ;;  %v1194_v47 = vmax.f32 %v271_v45, 0.0  ;;  %v367_v37 = vrot.slane %v1182_v17, 1 }
  0xab   : > { %v320_v49 = vrot.slane %v319_v41, 1  ;;  %v308_v50 = vrot.slane %v307_v42, 1  ;;  %v322_v51 = vrot.slane %v1190_v43, 4  ;;  %v310_v52 = vrot.slane %v1192_v44, 4 }
  0xac   : > { %v296_v53 = vrot.slane %v295_v46, 1  ;;  %v298_v54 = vrot.slane %v1194_v47, 4  ;;  %v375_v55 = vperm.slane %v367_v37, 0 }
  0xad   : > { %v321_v56 = vmax.f32 %v319_v41, %v320_v49  ;;  %v309_v57 = vmax.f32 %v307_v42, %v308_v50  ;;  %v323_v58 = vmax.f32 %v1190_v43, %v322_v51  ;;  %v311_v59 = vmax.f32 %v1192_v44, %v310_v52 }
  0xae   : > { %v297_v60 = vmax.f32 %v295_v46, %v296_v53  ;;  %v299_v61 = vmax.f32 %v1194_v47, %v298_v54  ;;  %v817_v41 = vsel %vm1201_vm1, 1.0, %v1021_v62  ;;  %v379_v46 = vperm.slane %v371_v16, 0 }
  0xaf   : > { %v344_v4 = vsub.f32 %v288_v22, %v321_v56  ;;  %v342_v5 = vsub.f32 %v286_v23, %v309_v57  ;;  %v324_v6 = vrot.slane %v323_v58, 2  ;;  %v312_v10 = vrot.slane %v311_v59, 2 }
  0xb0   : > { %v340_v11 = vsub.f32 %v284_v25, %v297_v60  ;;  %v300_v12 = vrot.slane %v299_v61, 2  ;;  %v283_v15 = vpop.xlane.xlu1 %282  ;;  %v377_v52 = vperm.slane %v369_v18, 0  ;;  %vm387_vm4 = vcmp.lt.s32.totalorder %v1186_v29, %v379_v46 }
  0xb1   : > { %v356_v19 = vmul.f32 1.442695, %v344_v4  ;;  %v352_v21 = vmul.f32 1.442695, %v342_v5  ;;  %v325_v24 = vmax.f32 %v323_v58, %v324_v6  ;;  %v313_v26 = vmax.f32 %v311_v59, %v312_v10  ;;  %v281_v27 = vpop.xlane.xlu0 %280 }
  0xb2   : > { %v348_v28 = vmul.f32 1.442695, %v340_v11  ;;  %v301_v30 = vmax.f32 %v299_v61, %v300_v12  ;;  %v1213_v31 = vmax.f32 %v283_v15, 0.0  ;;  %v1215_v22 = vmax.f32 %v281_v27, 0.0 }
  0xb3   : > { %888 = vpow2.f32 %v356_v19  ;;  %v326_v23 = vrot.slane %v325_v24, 1  ;;  %v314_v25 = vrot.slane %v313_v26, 1  ;;  %vm385_vm5 = vcmp.lt.s32.totalorder %v1186_v29, %v377_v52 }
  0xb4   : > { %890 = vpow2.f32 %v352_v21  ;;  %v302_v32 = vrot.slane %v301_v30, 1  ;;  %v334_v33 = vrot.slane %v1213_v31, 4  ;;  %v328_v34 = vrot.slane %v1215_v22, 4 }
  0xb5   : > { %892 = vpow2.f32 %v348_v28  ;;  %v327_v35 = vmax.f32 %v325_v24, %v326_v23  ;;  %v315_v36 = vmax.f32 %v313_v26, %v314_v25  ;;  %vm383_vm6 = vcmp.lt.s32.totalorder %v1186_v29, %v375_v55 }
  0xb6   : > { %v303_v38 = vmax.f32 %v301_v30, %v302_v32  ;;  %v335_v39 = vmax.f32 %v1213_v31, %v334_v33  ;;  %v329_v40 = vmax.f32 %v1215_v22, %v328_v34  ;;  %v822_v18 = vsel %vm387_vm4, 1.0, %v1021_v62 }
  0xb7   : > { %v345_v42 = vsub.f32 %v1190_v43, %v327_v35  ;;  %v343_v45 = vsub.f32 %v1192_v44, %v315_v36  ;;  %v373_v44 = vrot.slane %v1182_v17, 7  ;;  %v820_v26 = vsel %vm385_vm5, 1.0, %v1021_v62 }
  0xb8   : > { %v341_v49 = vsub.f32 %v1194_v47, %v303_v38  ;;  %v336_v50 = vrot.slane %v335_v39, 2  ;;  %v330_v51 = vrot.slane %v329_v40, 2  ;;  %v818_v30 = vsel %vm383_vm6, 1.0, %v1021_v62 }
  0xb9   : > { %v889_v53 = vpop.eup %888  ;;  %v358_v54 = vmul.f32 1.442695, %v345_v42  ;;  %v354_v56 = vmul.f32 1.442695, %v343_v45  ;;  %v381_v12 = vperm.slane %v373_v44, 0 }
  0xba   : > { %v891_v57 = vpop.eup %890  ;;  %v350_v58 = vmul.f32 1.442695, %v341_v49  ;;  %v337_v43 = vmax.f32 %v335_v39, %v336_v50  ;;  %v1233_v59 = vmul.f32 %v889_v53, %v821_v48  ;;  %v331_v61 = vmax.f32 %v329_v40, %v330_v51 }
  0xbb   : > { %v893_v60 = vpop.eup %892  ;;  %894 = vpow2.f32 %v358_v54  ;;  %v1235_v1 = vmul.f32 %v891_v57, %v819_v63  ;;  %vm389_vm7 = vcmp.lt.s32.totalorder %v1186_v29, %v381_v12  ;;  %v372_v48 = vrot.slane %v1182_v17, 6 }
  0xbc   : > { %896 = vpow2.f32 %v354_v56  ;;  %v338_v47 = vrot.slane %v337_v43, 1  ;;  %v1238_v4 = vmul.f32 %v893_v60, %v817_v41  ;;  %v443_v6 = vsel %vm414_vm3, %v1233_v59, 0.0 }
  0xbd   : > { %898 = vpow2.f32 %v350_v58  ;;  %v429_v5 = vsel %vm414_vm3, %v1235_v1, 0.0  ;;  %v332_v15 = vrot.slane %v331_v61, 1  ;;  %v444_v19 = vrot.slane %v443_v6, 4 }
  0xbe   : > { %v339_v10 = vmax.f32 %v337_v43, %v338_v47  ;;  %v430_v63 = vrot.slane %v429_v5, 4  ;;  %v415_v11 = vsel %vm414_vm3, %v1238_v4, 0.0  ;;  %v824_v17 = vsel %vm389_vm7, 1.0, %v1021_v62 }
  0xbf   : > { %v416_v16 = vrot.slane %v415_v11, 4  ;;  %v445_v23 = vadd.f32 %v444_v19, %v443_v6  ;;  %v333_v36 = vmax.f32 %v331_v61, %v332_v15  ;;  %v380_v61 = vperm.slane %v372_v48, 0 }
  0xc0   : > { %v347_v21 = vsub.f32 %v1213_v31, %v339_v10  ;;  %v431_v24 = vadd.f32 %v430_v63, %v429_v5 }
  0xc1   : > { %v895_v27 = vpop.eup %894  ;;  %v417_v28 = vadd.f32 %v416_v16, %v415_v11  ;;  %v446_v31 = vrot.slane %v445_v23, 2  ;;  %v346_v53 = vsub.f32 %v1215_v22, %v333_v36  ;;  %vm388_vm8 = vcmp.lt.s32.totalorder %v1186_v29, %v380_v61 }
  0xc2   : > { %v897_v25 = vpop.eup %896  ;;  %v362_v32 = vmul.f32 1.442695, %v347_v21  ;;  %v432_v33 = vrot.slane %v431_v24, 2  ;;  %v1252_v34 = vmul.f32 %v895_v27, %v822_v18  ;;  %v823_v27 = vsel %vm388_vm8, 1.0, %v1021_v62 }
  0xc3   : > { %v899_v35 = vpop.eup %898  ;;  %v418_v37 = vrot.slane %v417_v28, 2  ;;  %v1255_v38 = vmul.f32 %v897_v25, %v820_v26  ;;  %v447_v52 = vadd.f32 %v446_v31, %v445_v23  ;;  %v360_v6 = vmul.f32 1.442695, %v346_v53 }
  0xc4   : > { %900 = vpow2.f32 %v362_v32  ;;  %v433_v39 = vadd.f32 %v432_v33, %v431_v24  ;;  %v450_v40 = vsel %vm414_vm3, %v1252_v34, 0.0  ;;  %v1259_v41 = vmul.f32 %v899_v35, %v818_v30 }
  0xc5   : > { %v419_v42 = vadd.f32 %v418_v37, %v417_v28  ;;  %v451_v45 = vrot.slane %v450_v40, 4  ;;  %v436_v46 = vsel %vm414_vm3, %v1255_v38, 0.0  ;;  %v448_v5 = vrot.slane %v447_v52, 1 }
  0xc6   : > { %v434_v49 = vrot.slane %v433_v39, 1  ;;  %v437_v50 = vrot.slane %v436_v46, 4  ;;  %v422_v51 = vsel %vm414_vm3, %v1259_v41, 0.0 }
  0xc7   : > { %v420_v54 = vrot.slane %v419_v42, 1  ;;  %v452_v56 = vadd.f32 %v451_v45, %v450_v40  ;;  %v423_v55 = vrot.slane %v422_v51, 4  ;;  %v1276_v18 = vadd.f32 %v448_v5, %v447_v52 }
  0xc8   : > { %v435_v57 = vadd.f32 %v434_v49, %v433_v39  ;;  %v438_v58 = vadd.f32 %v437_v50, %v436_v46 }
  0xc9   : > { %v1267_v43 = vadd.f32 %v420_v54, %v419_v42  ;;  %v453_v44 = vrot.slane %v452_v56, 2  ;;  %v424_v60 = vadd.f32 %v423_v55, %v422_v51  ;;  %vm536_vm7 = vweird.f32 %v1276_v18 }
  0xca   : > { %v901_v47 = vpop.eup %900  ;;  %902 = vrcp.f32 %v435_v57  ;;  %v439_v10 = vrot.slane %v438_v58, 2  ;;  %vm506_vm9 = vweird.f32 %v435_v57  ;;  %v510_v23 = vand.u32 2147483647, %v435_v57 }
  0xcb   : > { %904 = vrcp.f32 %v1267_v43  ;;  %v454_v22 = vadd.f32 %v453_v44, %v452_v56  ;;  %v425_v63 = vrot.slane %v424_v60, 2  ;;  %v1273_v11 = vmul.f32 %v901_v47, %v824_v17 }
  0xcc   : > { %v440_v16 = vadd.f32 %v439_v10, %v438_v58  ;;  %906 = vpow2.f32 %v360_v6  ;;  %v512_v25 = vand.u32 2147483648, %v435_v57  ;;  %vm476_vm10 = vweird.f32 %v1267_v43 }
  0xcd   : > { %v455_v15 = vrot.slane %v454_v22, 1  ;;  %v426_v19 = vadd.f32 %v425_v63, %v424_v60  ;;  %v464_v12 = vsel %vm414_vm3, %v1273_v11, 0.0  ;;  %908 = vrcp.f32 %v1276_v18 }
  0xce   : > { %v441_v26 = vrot.slane %v440_v16, 1  ;;  %v465_v33 = vrot.slane %v464_v12, 4  ;;  %v480_v36 = vand.u32 2147483647, %v1267_v43  ;;  %v482_v31 = vand.u32 2147483648, %v1267_v43 }
  0xcf   : > { %v1280_v24 = vadd.f32 %v455_v15, %v454_v22  ;;  %v427_v29 = vrot.slane %v426_v19, 1  ;;  %vm1296_vm12 = vcmp.eq.f32.partialorder %v510_v23, 8.507059e+37  ;;  %v513_v53 = vor.u32 1.1754944e-38, %v512_v25 }
  0xd0   : > { %v903_v21 = vpop.eup %902  ;;  %v1288_v37 = vadd.f32 %v441_v26, %v440_v16  ;;  %v466_v50 = vadd.f32 %v465_v33, %v464_v12  ;;  %vm1302_vm14 = vcmp.eq.f32.partialorder %v480_v36, 8.507059e+37  ;;  %v483_v58 = vor.u32 1.1754944e-38, %v482_v31 }
  0xd1   : > { %v905_v28 = vpop.eup %904  ;;  %v502_v30 = vmul.f32 %v903_v21, %v435_v57  ;;  %910 = vrcp.f32 %v1280_v24  ;;  %vm507_vm11 = vweird.f32 %v903_v21  ;;  %v1291_v39 = vadd.f32 %v427_v29, %v426_v19 }
  0xd2   : > { %v472_v32 = vmul.f32 %v905_v28, %v1267_v43  ;;  %v907_v40 = vpop.eup %906  ;;  %v555_v45 = vand.u32 2147483647, %v1280_v24  ;;  %v557_v46 = vand.u32 2147483648, %v1280_v24  ;;  %912 = vrcp.f32 %v1288_v37  ;;  %vm508_vm15 = vmor %vm506_vm9, %vm507_vm11 }
  0xd3   : > { %v503_v35 = vsub.f32 1.0, %v502_v30  ;;  %vm477_vm13 = vweird.f32 %v905_v28  ;;  %v1300_v51 = vpop.eup %908  ;;  %914 = vrcp.f32 %v1291_v39  ;;  %vm551_vm0 = vweird.f32 %v1280_v24 }
  0xd4   : > { %v473_v62 = vsub.f32 1.0, %v472_v32  ;;  %v1310_v44 = vmul.f32 %v907_v40, %v823_v27  ;;  %vm478_vm1 = vmor %vm476_vm10, %vm477_vm13  ;;  %vm1315_vm2 = vcmp.eq.f32.partialorder %v555_v45, 8.507059e+37  ;;  %v558_v17 = vor.u32 1.1754944e-38, %v557_v46 }
  0xd5   : > { %v504_v42 = vmul.f32 %v903_v21, %v503_v35  ;;  %vm521_vm4 = vweird.f32 %v1288_v37  ;;  %v467_v6 = vrot.slane %v466_v50, 2  ;;  %v532_v15 = vmul.f32 %v1300_v51, %v1276_v18 }
  0xd6   : > { %v474_v49 = vmul.f32 %v905_v28, %v473_v62  ;;  %v525_v12 = vand.u32 2147483647, %v1288_v37  ;;  %vm491_vm6 = vweird.f32 %v1291_v39  ;;  %v457_v32 = vsel %vm414_vm3, %v1310_v44, 0.0 }
  0xd7   : > { %v505_v52 = vadd.f32 %v903_v21, %v504_v42  ;;  %v911_v56 = vpop.eup %910  ;;  %v458_v62 = vrot.slane %v457_v32, 4  ;;  %v495_v40 = vand.u32 2147483647, %v1291_v39  ;;  %v497_v42 = vand.u32 2147483648, %v1291_v39 }
  0xd8   : > { %v475_v55 = vadd.f32 %v905_v28, %v474_v49  ;;  %v547_v61 = vmul.f32 %v911_v56, %v1280_v24  ;;  %v913_v22 = vpop.eup %912  ;;  %vm552_vm5 = vweird.f32 %v911_v56  ;;  %vm526_vm11 = vcmp.eq.f32.partialorder %v525_v12, 8.507059e+37 }
  0xd9   : > { %v509_v60 = vsel %vm508_vm15, %v903_v21, %v505_v52  ;;  %v517_v19 = vmul.f32 %v913_v22, %v1288_v37  ;;  %v468_v21 = vadd.f32 %v467_v6, %v466_v50  ;;  %v915_v26 = vpop.eup %914  ;;  %vm522_vm8 = vweird.f32 %v913_v22  ;;  %vm553_vm9 = vmor %vm551_vm0, %vm552_vm5 }
  0xda   : > { %v514_v57 = vsel %vm1296_vm12, %v513_v53, %v509_v60  ;;  %v479_v5 = vsel %vm478_vm1, %v905_v28, %v475_v55  ;;  %v548_v63 = vsub.f32 1.0, %v547_v61  ;;  %v533_v28 = vsub.f32 1.0, %v532_v15  ;;  %vm523_vm3 = vmor %vm521_vm4, %vm522_vm8 }
  0xdb   : > { %v515_v10 = vmul.f32 %v514_v57, %v1235_v1  ;;  %v484_v43 = vsel %vm1302_vm14, %v483_v58, %v479_v5  ;;  %v527_v1 = vand.u32 2147483648, %v1288_v37  ;;  %v518_v30 = vsub.f32 1.0, %v517_v19 }
  0xdc   : > { %v485_v16 = vmul.f32 %v484_v43, %v1238_v4  ;;  %v549_v27 = vmul.f32 %v911_v56, %v548_v63  ;;  %v487_v23 = vmul.f32 %v915_v26, %v1291_v39  ;;  %v469_v29 = vrot.slane %v468_v21, 1 }
  0xdd   : > { %603 = vperm.xlu1 %886, %v515_v10   ;;  %v534_v25 = vmul.f32 %v1300_v51, %v533_v28  ;;  %v519_v33 = vmul.f32 %v913_v22, %v518_v30  ;;  %vm492_vm10 = vweird.f32 %v915_v26  ;;  %v528_v24 = vor.u32 1.1754944e-38, %v527_v1 }
  0xde   : > { %593 = vperm.xlu2 %884, %v485_v16   ;;  %v550_v4 = vadd.f32 %v911_v56, %v549_v27  ;;  %v488_v35 = vsub.f32 1.0, %v487_v23  ;;  %v470_v36 = vadd.f32 %v469_v29, %v468_v21  ;;  %vm537_vm12 = vweird.f32 %v1300_v51  ;;  %vm493_vm13 = vmor %vm491_vm6, %vm492_vm10 }
  0xdf   : > { %v520_v46 = vadd.f32 %v913_v22, %v519_v33  ;;  %v535_v53 = vadd.f32 %v1300_v51, %v534_v25  ;;  %v459_v54 = vadd.f32 %v458_v62, %v457_v32  ;;  %v540_v55 = vand.u32 2147483647, %v1276_v18  ;;  %vm538_vm15 = vmor %vm536_vm7, %vm537_vm12 }
  0xe0   : > { %v554_v31 = vsel %vm553_vm9, %v911_v56, %v550_v4  ;;  %v489_v48 = vmul.f32 %v915_v26, %v488_v35  ;;  %916 = vrcp.f32 %v470_v36  ;;  %v542_v37 = vand.u32 2147483648, %v1276_v18 }
  0xe1   : > { %v559_v45 = vsel %vm1315_vm2, %v558_v17, %v554_v31  ;;  %v524_v50 = vsel %vm523_vm3, %v913_v22, %v520_v46  ;;  %vm496_vm14 = vcmp.eq.f32.partialorder %v495_v40, 8.507059e+37  ;;  %v460_v61 = vrot.slane %v459_v54, 2 }
  0xe2   : > { %v560_v49 = vmul.f32 %v559_v45, %v1252_v34  ;;  %v490_v52 = vadd.f32 %v915_v26, %v489_v48  ;;  %v529_v56 = vsel %vm526_vm11, %v528_v24, %v524_v50  ;;  %v498_v34 = vor.u32 1.1754944e-38, %v497_v42 }
  0xe3   : > { %v530_v58 = vmul.f32 %v529_v56, %v1255_v38  ;;  %v539_v57 = vsel %vm538_vm15, %v1300_v51, %v535_v53  ;;  %v461_v5 = vadd.f32 %v460_v61, %v459_v54  ;;  %v543_v22 = vor.u32 1.1754944e-38, %v542_v37 }
  0xe4   : > { %v494_v60 = vsel %vm493_vm13, %v915_v26, %v490_v52  ;;  %vm541_vm0 = vcmp.eq.f32.partialorder %v540_v55, 8.507059e+37  ;;  %v587_v63 = vand.u32 2147483648, %v470_v36  ;;  %v585_v18 = vand.u32 2147483647, %v470_v36 }
  0xe5   : > { %618 = vperm.xlu1 %886, %v560_v49   ;;  %v499_v47 = vsel %vm496_vm14, %v498_v34, %v494_v60  ;;  %v462_v38 = vrot.slane %v461_v5, 1  ;;  %v544_v43 = vsel %vm541_vm0, %v543_v22, %v539_v57  ;;  %vm581_vm2 = vweird.f32 %v470_v36 }
  0xe6   : > { %v917_v17 = vpop.eup %916  ;;  %608 = vperm.xlu2 %884, %v530_v58   ;;  %v500_v39 = vmul.f32 %v499_v47, %v1259_v41  ;;  %v545_v19 = vmul.f32 %v544_v43, %v1233_v59  ;;  %v588_v41 = vor.u32 1.1754944e-38, %v587_v63  ;;  %vm586_vm5 = vcmp.eq.f32.partialorder %v585_v18, 8.507059e+37 }
  0xe7   : > { %v577_v6 = vmul.f32 %v917_v17, %v470_v36  ;;  %v463_v15 = vadd.f32 %v462_v38, %v461_v5  ;;  %vm582_vm1 = vweird.f32 %v917_v17  ;;  %v648_v46 = vand.u32 127, %v364_v20 }
  0xe8   : > { %598 = vperm.xlu0 %885, %v500_v39   ;;  %vm583_vm4 = vmor %vm581_vm2, %vm582_vm1  ;;  %vm657_vm10 = vcmask 1041409   ;;  %vm659_vm3 = vcmask 1042434   ;;  %vm661_vm11 = vcmask 1043459   ;;  %vm663_vm12 = vcmask 1044484  }
  0xe9   : > { %v578_v10 = vsub.f32 1.0, %v577_v6  ;;  %918 = vrcp.f32 %v463_v15  ;;  %v572_v30 = vand.u32 2147483648, %v463_v15  ;;  %v570_v59 = vand.u32 2147483647, %v463_v15 }
  0xea   : > { %vm566_vm7 = vweird.f32 %v463_v15  ;;  %vm665_vm13 = vcmask 1045509   ;;  %vm667_vm14 = vcmask 1046534   ;;  %vm669_vm15 = vcmask 1047559  }
  0xeb   : > { %v579_v16 = vmul.f32 %v917_v17, %v578_v10  ;;  %v573_v4 = vor.u32 1.1754944e-38, %v572_v30  ;;  %vm571_vm9 = vcmp.eq.f32.partialorder %v570_v59, 8.507059e+37  ;;  %vm672_vm0 = vcmask 64512  }
  0xed   : > { %v580_v12 = vadd.f32 %v917_v17, %v579_v16 }
  0xee   : > { %613 = vperm.xlu2 %884, %v545_v19  }
  0xef   : > { %v584_v51 = vsel %vm583_vm4, %v917_v17, %v580_v12  ;;  %v919_v27 = vpop.eup %918 }
  0xf0   : > { %v589_v21 = vsel %vm586_vm5, %v588_v41, %v584_v51  ;;  %v562_v1 = vmul.f32 %v919_v27, %v463_v15  ;;  %vm567_vm6 = vweird.f32 %v919_v27 }
  0xf1   : > { %v590_v26 = vmul.f32 %v589_v21, %v1273_v11  ;;  %vm568_vm8 = vmor %vm566_vm7, %vm567_vm6 }
  0xf2   : > { %v563_v28 = vsub.f32 1.0, %v562_v1 }
  0xf3   : > { %628 = vperm.xlu1 %886, %v590_v26  }
  0xf4   : > { %v564_v23 = vmul.f32 %v919_v27, %v563_v28 }
  0xf6   : > { %v565_v29 = vadd.f32 %v919_v27, %v564_v23 }
  0xf8   : > { %v569_v25 = vsel %vm568_vm8, %v919_v27, %v565_v29 }
  0xf9   : > { %v574_v32 = vsel %vm571_vm9, %v573_v4, %v569_v25 }
  0xfa   : > { %v575_v33 = vmul.f32 %v574_v32, %v1310_v44 }
  0xfc   : > { %623 = vperm.xlu2 %884, %v575_v33  }
 0x138   : > { %v594_v11 = vpop.permute.xlu2 %593 }
 0x139   : > { %v631_v35 = vmul.f32 %v594_v11, %v1152_v3 }
 0x13b   : > { %639 = vst [vmem:[%s1367_s23] sm:$0xff] %v631_v35 }
 0x140   : > { %v609_v36 = vpop.permute.xlu2 %608 }
 0x141   : > { %v634_v62 = vmul.f32 %v609_v36, %v1159_v8  ;;  %v652_v52 = vperm.slane %v609_v36, %v648_v46 }
 0x143   : > { %642 = vst [vmem:[%s1367_s23 + $0x18] sm:$0xff] %v634_v62 }
 0x148   : > { %v614_v31 = vpop.permute.xlu2 %613 }
 0x149   : > { %v635_v44 = vmul.f32 %v614_v31, %v1145_v0  ;;  %v649_v0 = vperm.slane %v594_v11, %v648_v46  ;;  %v653_v53 = vperm.slane %v614_v31, %v648_v46 }
 0x14b   : > { %643 = vst [vmem:[%s1367_s23 + $0x20] sm:$0xff] %v635_v44 }
 0x14f   : > { %v604_v40 = vpop.permute.xlu1 %603 }
 0x150   : > { %v633_v3 = vmul.f32 %v604_v40, %v1150_v2  ;;  %v651_v50 = vperm.slane %v604_v40, %v648_v46 }
 0x152   : > { %641 = vst [vmem:[%s1367_s23 + $0x10] sm:$0xff] %v633_v3 }
 0x156   : > { %v624_v48 = vpop.permute.xlu2 %623 }
 0x157   : > { %v619_v42 = vpop.permute.xlu1 %618  ;;  %v637_v8 = vmul.f32 %v624_v48, %v1168_v14  ;;  %v655_v34 = vperm.slane %v624_v48, %v648_v46 }
 0x158   : > { %v636_v45 = vmul.f32 %v619_v42, %v1157_v7 }
 0x159   : > { %645 = vst [vmem:[%s1367_s23 + $0x30] sm:$0xff] %v637_v8 }
 0x15a   : > { %644 = vst [vmem:[%s1367_s23 + $0x28] sm:$0xff] %v636_v45  ;;  %v599_v49 = vpop.permute.xlu0 %598 }
 0x15b   : > { %v632_v24 = vmul.f32 %v599_v49, %v1161_v9  ;;  %v650_v2 = vperm.slane %v599_v49, %v648_v46  ;;  %v654_v9 = vperm.slane %v619_v42, %v648_v46 }
 0x15d   : > { %640 = vst [vmem:[%s1367_s23 + $0x8] sm:$0xff] %v632_v24  ;;  %v658_v7 = vsel %vm657_vm10, %v650_v2, %v649_v0 }
 0x15e   : > { %v660_v20 = vsel %vm659_vm3, %v651_v50, %v658_v7 }
 0x15f   : > { %v662_v14 = vsel %vm661_vm11, %v652_v52, %v660_v20 }
 0x160   : > { %v664_v54 = vsel %vm663_vm12, %v653_v53, %v662_v14 }
 0x161   : > { %v666_v56 = vsel %vm665_vm13, %v654_v9, %v664_v54 }
 0x162   : > { %v668_v60 = vsel %vm667_vm14, %v655_v34, %v666_v56 }
 0x165   : > { %v629_v55 = vpop.permute.xlu1 %628 }
 0x166   : > { %v638_v37 = vmul.f32 %v629_v55, %v1166_v13  ;;  %v656_v58 = vperm.slane %v629_v55, %v648_v46 }
 0x168   : > { %646 = vst [vmem:[%s1367_s23 + $0x38] sm:$0xff] %v638_v37  ;;  %v670_v61 = vsel %vm669_vm15, %v656_v58, %v668_v60 }
 0x169   : > { %673 = vst.msk [vmem:[%s247_s14] sm:$0xff] %vm672_vm0, %v670_v61 }
 0x16a   : > { %977 = shalt.err (!%p974_p7)
}
 0x16b   : > { %s1022_s7 = smov 128   ;;  %s1023_s23 = smov 8  }
 0x16c   : > { %834 = dma.vmem_to_hbm [thread:$0]  (%p1099_p11), %s1388_s6, 1024, %s694_s8, %s675_s9, %s1022_s7, %s1022_s7, %s1023_s23  }
 0x16d PF: > { %s711_s30 = sand.u32 1, %s1004_s15   ;;  %p1445_p5 = scmp.ge.s32.totalorder %s1016_s18, 2 }
 0x16e   : > { %s712_s5 = scalar_lea.sflag [#allocation4], %s711_s30 }
 0x16f   : > { %p841_p8 = pnand %p1445_p5, %p1103_p12 }
 0x171   : > { %p842_p10 = pneg %p841_p8 }
 0x173   : > { %999 = dma.done.wait (%p842_p10), %s712_s5, 1024  }
 0x174   : > { %1001 = vsyncadd (%p842_p10), %s712_s5, 4294966272  ;;  %p18_p2 = scmp.ge.s32.totalorder %s1074_s21, 4   ;;  %s1446_s15 = smov %s1008_s16 }
 0x175   : > { %s1447_s16 = smov %s1012_s17  ;;  %s1448_s17 = smov %s1086_s24 }
 0x176   : > { %s1449_s18 = smov %s1074_s21  ;;  %20 = sbr.rel (!%p18_p2) target bundleno = 5 (0x5), region = 92 }
 0x17b   :  { %725 = vsyncpa [#allocation3], 1 }
 0x17c   :  { %727 = vsyncpa [#allocation3 + $0x1], 1 }
 0x17d   :  { %728 = vsyncpa [#allocation4], 1 }
 0x17e   :  { %730 = vsyncpa [#allocation4 + $0x1], 1 }

</bundles_post_ra>
